<compile_context>
chip_gen: v7x
topology: tpu7x:2x2x1
jax: 0.10.0
libtpu: 0.0.40
codegen_flags: <defaults>
</compile_context>

<pallas_src>
import functools

import jax
import jax.numpy as jnp
from jax.experimental import pallas as pl
from jax.experimental.pallas import tpu as pltpu


def _round_up(x, m):
    return ((x + m - 1) // m) * m


def _cdiv(a, b):
    return (a + b - 1) // b


def _physical_vmem_bytes():
    try:
        return int(pltpu.get_tpu_info().vmem_capacity_bytes)
    except Exception:
        return 64 * 1024 * 1024  # conservative fallback (v7x per-TC VMEM)


def _pick_k_tile(K, CF, itemsize, max_tile_rows=None):
    """Pick (TK, Kp, num_tiles) for the K grid axis.

    TK is sized so the two double-buffered X tiles use ~40% of physical VMEM
    (≈25 MiB on v7x, ≈51 MiB on v5e/v6e), then reduced to minimize the padded
    fraction of the final (clamped) tile.
    """
    vmem = _physical_vmem_bytes()
    budget = (vmem * 2) // 5
    cap = budget // (2 * CF * itemsize)          # rows s.t. 2 X tiles fit budget
    cap = max((cap // 128) * 128, 128)
    # TODO(synk): if CF is so large that even TK=128 double-buffered overflows
    # VMEM, add a second "arbitrary" grid axis over CF with an f32 accumulator
    # scratch and pl.when init/finalize.
    if max_tile_rows is not None:
        cap = max(min(cap, (max_tile_rows // 128) * 128), 128)

    K8 = _round_up(K, 8)
    if K8 <= cap:
        # Single tile: TK only needs to be a multiple of 8 (out block == full dim).
        return K8, K8, 1
    num_tiles = _cdiv(K, cap)
    TK = _round_up(_cdiv(K, num_tiles), 128)     # minimize padded rows
    return TK, TK * num_tiles, num_tiles


def _full_rank_kernel(intercept_ref, beta_ref, x_ref, out_ref):
    # intercept_ref: (1,) f32 in SMEM
    # beta_ref:      (1, CF) VMEM (resident)      x_ref: (TK, CF) VMEM (pipelined)
    # out_ref:       (1, TK) f32 VMEM -- lane-dense full-width stores.
    logits = jax.lax.dot_general(                # beta @ x_tile.T on the MXU
        beta_ref[...],
        x_ref[...],
        dimension_numbers=(((1,), (1,)), ((), ())),
        preferred_element_type=jnp.float32,
    )
    z = logits + intercept_ref[0]
    out_ref[...] = 1.0 / (1.0 + jnp.exp(-z))     # fused sigmoid epilogue (EUP)


def full_rank_forward(X, Beta, intercept, *, max_tile_rows=None):
    """X: (K, C, T, D), Beta: (C, T, D), intercept: (1,).

    Returns (sigmoid(einsum('ctd,kctd->k', Beta, X) + intercept), Beta).
    Fast path: feed X (and Beta) as bf16 to halve HBM traffic; accumulation
    stays f32 on the MXU.
    """
    K, C, T, D = X.shape
    CF = C * T * D
    itemsize = jnp.dtype(X.dtype).itemsize

    TK, Kp, num_tiles = _pick_k_tile(K, CF, itemsize, max_tile_rows)

    # No padding copies of X: free reshape only; dtype passes through.
    x2 = X.reshape(K, CF)
    beta2 = Beta.reshape(1, CF).astype(X.dtype)   # tiny row; bf16 if X is bf16
    b = intercept.reshape(1).astype(jnp.float32)  # scalar -> SMEM

    # VMEM limit sized from the actual footprint (double-buffered X, Beta, out).
    need = 2 * (TK * CF * itemsize + CF * itemsize + TK * 4)
    vmem_limit = min(max(int(need * 1.25) + (2 << 20), 16 << 20),
                     _physical_vmem_bytes() - (8 << 20))

    cost = pl.CostEstimate(
        flops=2 * K * CF,
        transcendentals=K,
        bytes_accessed=K * CF * itemsize + CF * itemsize + K * 4,
    )

    probs = pl.pallas_call(
        _full_rank_kernel,
        out_shape=jax.ShapeDtypeStruct((1, Kp), jnp.float32),
        grid_spec=pltpu.PrefetchScalarGridSpec(
            num_scalar_prefetch=0,
            grid=(num_tiles,),
            in_specs=[
                pl.BlockSpec(memory_space=pltpu.MemorySpace.SMEM),  # intercept
                pl.BlockSpec((1, CF), lambda i: (0, 0)),    # Beta row: resident
                pl.BlockSpec((TK, CF), lambda i: (i, 0)),   # X tile: pipelined
            ],
            out_specs=pl.BlockSpec((1, TK), lambda i: (0, i)),
        ),
        compiler_params=pltpu.CompilerParams(
            dimension_semantics=("parallel",),               # megacore on v7x
            vmem_limit_bytes=vmem_limit,
        ),
        cost_estimate=cost,
    )(b, beta2, x2)

    out = probs[0, :K]          # drop clamped-edge-block garbage positions
    return out, Beta


if __name__ == "__main__":
    # Small shapes consistent with the module; CF = 7*13*7 = 637 is deliberately
    # NOT a multiple of 128 (exercises the full-array-dim CF block path) and
    # K = 300 does not divide the tile (exercises the clamped edge block).
    n_units, n_t_bins, half_window = 7, 13, 3
    window = 2 * half_window + 1
    n_trials = 300

    key = jax.random.PRNGKey(0)
    k_b, k_i, k_x = jax.random.split(key, 3)
    Beta = jax.random.normal(k_b, (n_units, n_t_bins, window), dtype=jnp.float32)
    intercept = jax.random.normal(k_i, (1,), dtype=jnp.float32)
    X = jax.random.normal(k_x, (n_trials, n_units, n_t_bins, window),
                          dtype=jnp.float32)

    # Small max_tile_rows so the demo exercises a multi-step pipelined grid
    # with an out-of-bounds final K tile; production callers leave it None.
    fwd = jax.jit(functools.partial(full_rank_forward, max_tile_rows=128))
    out, beta_out = fwd(X, Beta, intercept)
    out = jax.block_until_ready(out)

    # Pure-JAX reference.
    logits_ref = jnp.einsum('ctd,kctd->k', Beta, X) + intercept[0]
    out_ref = jax.nn.sigmoid(logits_ref)

    assert out.shape == (n_trials,)
    assert beta_out.shape == (n_units, n_t_bins, window)
    assert jnp.allclose(out, out_ref, atol=2e-4, rtol=2e-4), (
        float(jnp.max(jnp.abs(out - out_ref))))

    print("KERNEL_OK")
</pallas_src>

<mosaic_0001>
module attributes {stable_mosaic.version = 11 : i64} {
  func.func @_full_rank_kernel(%arg0: i32, %arg1: memref<1xf32, #tpu.memory_space<smem>>, %arg2: memref<1x637xf32, #tpu.memory_space<vmem>>, %arg3: memref<128x637xf32, #tpu.memory_space<vmem>>, %arg4: memref<1x128xf32, #tpu.memory_space<vmem>>) attributes {dimension_semantics = [#tpu.dimension_semantics<parallel>], iteration_bounds = array<i64: 3>, scalar_prefetch = 0 : i64, scratch_operands = 0 : i64, tpu.core_type = #tpu.core_type<tc>, window_params = [{transform_indices = @transform_0, window_bounds = array<i64: 1>}, {pipeline_mode = #tpu.pipeline_mode<synchronous>, transform_indices = @transform_1, window_bounds = array<i64: 1, 637>}, {transform_indices = @transform_2, window_bounds = array<i64: 128, 637>}, {transform_indices = @transform_3, window_bounds = array<i64: 1, 128>}]} {
    %c0 = arith.constant 0 : index
    %c0_0 = arith.constant 0 : index
    %0 = vector.load %arg2[%c0, %c0_0] : memref<1x637xf32, #tpu.memory_space<vmem>>, vector<1x637xf32>
    %c0_1 = arith.constant 0 : index
    %c0_2 = arith.constant 0 : index
    %1 = vector.load %arg3[%c0_1, %c0_2] : memref<128x637xf32, #tpu.memory_space<vmem>>, vector<128x637xf32>
    %cst = arith.constant dense<0.000000e+00> : vector<1x128xf32>
    %2 = tpu.matmul %0, %1, %cst {dimension_numbers = #tpu.dot_dimension_numbers<[1], [1], [0], [0], [0, 0, 1, 0], [], []>} : vector<1x637xf32>, vector<128x637xf32>, vector<1x128xf32> -> vector<1x128xf32>
    %c0_3 = arith.constant 0 : index
    %3 = memref.load %arg1[%c0_3] : memref<1xf32, #tpu.memory_space<smem>>
    %4 = vector.broadcast %3 : f32 to vector<1x128xf32>
    %5 = arith.addf %2, %4 : vector<1x128xf32>
    %cst_4 = arith.constant 0.000000e+00 : f32
    %6 = vector.broadcast %cst_4 : f32 to vector<1x128xf32>
    %7 = arith.subf %6, %5 : vector<1x128xf32>
    %8 = math.exp %7 : vector<1x128xf32>
    %cst_5 = arith.constant 1.000000e+00 : f32
    %9 = vector.broadcast %cst_5 : f32 to vector<1x128xf32>
    %10 = arith.addf %9, %8 : vector<1x128xf32>
    %cst_6 = arith.constant 1.000000e+00 : f32
    %11 = vector.broadcast %cst_6 : f32 to vector<1x128xf32>
    %12 = arith.divf %11, %10 : vector<1x128xf32>
    %c0_7 = arith.constant 0 : index
    %c0_8 = arith.constant 0 : index
    %13 = vector.load %arg4[%c0_7, %c0_8] : memref<1x128xf32, #tpu.memory_space<vmem>>, vector<1x128xf32>
    tpu.vector_store %arg4[%c0_7, %c0_8], %12 {strides = array<i32>} : memref<1x128xf32, #tpu.memory_space<vmem>>, vector<1x128xf32>,
    return
  }
  func.func @transform_0(%arg0: i32) -> i32 {
    %c0_i32 = arith.constant 0 : i32
    %c0_i32_0 = arith.constant 0 : i32
    return %c0_i32 : i32
  }
  func.func @transform_1(%arg0: i32) -> (i32, i32) {
    %c0_i32 = arith.constant 0 : i32
    %c0_i32_0 = arith.constant 0 : i32
    %c0_i32_1 = arith.constant 0 : i32
    return %c0_i32, %c0_i32_0 : i32, i32
  }
  func.func @transform_2(%arg0: i32) -> (i32, i32) {
    %c0_i32 = arith.constant 0 : i32
    %c0_i32_0 = arith.constant 0 : i32
    return %arg0, %c0_i32 : i32, i32
  }
  func.func @transform_3(%arg0: i32) -> (i32, i32) {
    %c0_i32 = arith.constant 0 : i32
    %c0_i32_0 = arith.constant 0 : i32
    return %c0_i32, %arg0 : i32, i32
  }
}

</mosaic_0001>

<bundles_post_ra>
// kernel: full_rank_forward.1
= control target key start
LH: loop header
LB: loop body
LE: loop exit
PB: predicated region body
PF: predicated region fallthrough
CT: control target
= control target key end

     0   :  { %s849_s14 = smov 0   ;;  %s988_s0 = inlined_call_operand.<no memory space> [shape: f32[1], index: 0, kind: input, shape index: {}]   ;;  %s989_s1 = inlined_call_operand.vmem [shape: f32[1,637], index: 1, kind: input, shape index: {}]   ;;  %s990_s2 = inlined_call_operand.vmem [shape: f32[300,637], index: 2, kind: input, shape index: {}]   ;;  %s991_s3 = inlined_call_operand.vmem [shape: f32[1,384], index: 3, kind: output, shape index: {}]  }
   0x1   :  { %8 = sst [smem:[#allocation2]] %s988_s0 }
   0x2 LB: > { %s855_s15 = sadd.s32 4294967295, %s821_s14   ;;  %p625_p0 = scmp.ge.s32.totalorder %s821_s14, 1  ;;  %s821_s14 = sphi %s849_s14, %s14_s14  }
   0x3   : > { %p150_p1 = scmp.lt.s32.totalorder %s821_s14, 4 }
   0x5   : > { %p151_p2 = pnand %p625_p0, %p150_p1 }
   0x6   : > { %s626_s16 = sshll.u32 (!%p151_p2), %s855_s15, 4  ;;  %v282_v0 = vlaneseq (!%p151_p2)  ;;  %v198_v2 = vld [vmem:[%s989_s1] sm:$0x1f] (!%p151_p2)  ;;  %vm306_vm0 = vcmask (!%p151_p2), 1022976   ;;  %vm824_vm2 = vmmov (!%p151_p2), 0   ;;  %s279_s22 = sld [smem:[#allocation2]] (!%p151_p2) }
   0x7   : > { %154 = sbr.rel (%p151_p2) target bundleno = 392 (0x188), region = 32  ;;  %p184_p3 = scmp.lt.s32.totalorder (!%p151_p2), %s626_s16, 37  ;;  %vm942_vm1 = vmpackc.low (!%p151_p2), %vm306_vm0, %vm306_vm0 }
   0x8   : > { %v283_v1 = vshrl.u32 (!%p151_p2), %v282_v0, 7  ;;  %p195_p4 = scmp.lt.s32.totalorder (!%p151_p2), %s855_s15, 2 }
   0xa   : > { %v296_v3 = vsub.s32 (!%p151_p2), 3, %v283_v1  ;;  %v292_v4 = vsub.s32 (!%p151_p2), 2, %v283_v1  ;;  %v288_v5 = vsub.s32 (!%p151_p2), 1, %v283_v1  ;;  %v284_v6 = vsub.s32 (!%p151_p2), 0, %v283_v1 }
   0xb   : > { %v300_v7 = vsub.s32 (!%p151_p2), 4, %v283_v1 }
   0xc   : > { %v297_v8 = vrot.slane (!%p151_p2), %v198_v2, %v296_v3  ;;  %v863_v9 = vrot.slane (!%p151_p2), %v198_v2, %v292_v4  ;;  %v289_v10 = vrot.slane (!%p151_p2), %v198_v2, %v288_v5  ;;  %v865_v11 = vrot.slane (!%p151_p2), %v198_v2, %v284_v6 }
   0xd   : > { %v872_v12 = vrot.slane (!%p151_p2), %v198_v2, %v300_v7 }
   0xe   : > { %s995_s16 = smov (!%p184_p3, %s626_s16), 37  ;;  %491 = vmatprep.mubr.f32.mxu0 %v297_v8  ;;  %421 = vmatprep.mubr.f32.mxu1 %v289_v10  ;;  %s997_s15 = smov (!%p195_p4, %s855_s15), 2 }
   0xf   : > { %s799_s18 = smul.u32 40, %s995_s16  ;;  %s197_s25 = scalar_lea.vmem %s991_s3, %s997_s15 }
  0x11   : > { %s870_s21 = scalar_lea.vmem %s990_s2, %s799_s18 }
  0x12   : > { %v202_v13 = vld [vmem:[%s870_s21 + $0x18] sm:$0xff]  ;;  %v207_v14 = vld [vmem:[%s870_s21 + $0x40] sm:$0xff]  ;;  %v201_v15 = vld [vmem:[%s870_s21 + $0x10] sm:$0xff] }
  0x13   : > { %v731_v16 = vpack.c.bf16 %v207_v14, %v202_v13  ;;  %v206_v17 = vld [vmem:[%s870_s21 + $0x38] sm:$0xff]  ;;  %v212_v18 = vld [vmem:[%s870_s21 + $0x68] sm:$0xff]  ;;  %v217_v19 = vld [vmem:[%s870_s21 + $0x90] sm:$0xff] }
  0x14   : > { %v733_v20 = vpack.c.bf16 %v206_v17, %v201_v15  ;;  %v735_v21 = vpack.c.bf16 %v217_v19, %v212_v18  ;;  %v211_v22 = vld [vmem:[%s870_s21 + $0x60] sm:$0xff]  ;;  %v216_v23 = vld [vmem:[%s870_s21 + $0x88] sm:$0xff]  ;;  %v222_v24 = vld [vmem:[%s870_s21 + $0xb8] sm:$0xff] }
  0x15   : > { %732 = vmatprep.subr.bf16.mxu0 %v731_v16  ;;  %v227_v25 = vld [vmem:[%s870_s21 + $0xe0] sm:$0xff]  ;;  %v737_v26 = vpack.c.bf16 %v216_v23, %v211_v22  ;;  %v200_v28 = vld [vmem:[%s870_s21 + $0x8] sm:$0xff]  ;;  %v205_v29 = vld [vmem:[%s870_s21 + $0x30] sm:$0xff] }
  0x16   : > { %734 = vmatpush1.bf16.xpose.msra.mxu0 %v733_v20  ;;  %v739_v27 = vpack.c.bf16 %v227_v25, %v222_v24  ;;  %v199_v30 = vld [vmem:[%s870_s21] sm:$0xff]  ;;  %v204_v31 = vld [vmem:[%s870_s21 + $0x28] sm:$0xff]  ;;  %v699_v32 = vpack.c.bf16 %v205_v29, %v200_v28  ;;  %v210_v34 = vld [vmem:[%s870_s21 + $0x58] sm:$0xff] }
  0x17   : > { %736 = vmatprep.subr.bf16.mxu0 %v735_v21  ;;  %v701_v33 = vpack.c.bf16 %v204_v31, %v199_v30  ;;  %v221_v35 = vld [vmem:[%s870_s21 + $0xb0] sm:$0xff]  ;;  %v226_v36 = vld [vmem:[%s870_s21 + $0xd8] sm:$0xff]  ;;  %v215_v37 = vld [vmem:[%s870_s21 + $0x80] sm:$0xff] }
  0x18   : > { %v232_v38 = vld [vmem:[%s870_s21 + $0x108] sm:$0xff]  ;;  %v237_v39 = vld [vmem:[%s870_s21 + $0x130] sm:$0xff]  ;;  %700 = vmatprep.subr.bf16.mxu1 %v699_v32  ;;  %v703_v40 = vpack.c.bf16 %v215_v37, %v210_v34  ;;  %v741_v41 = vpack.c.bf16 %v226_v36, %v221_v35  ;;  %v214_v43 = vld [vmem:[%s870_s21 + $0x78] sm:$0xff] }
  0x19   : > { %702 = vmatpush1.bf16.xpose.msra.mxu1 %v701_v33  ;;  %v209_v42 = vld [vmem:[%s870_s21 + $0x50] sm:$0xff]  ;;  %v743_v44 = vpack.c.bf16 %v237_v39, %v232_v38  ;;  %v220_v45 = vld [vmem:[%s870_s21 + $0xa8] sm:$0xff]  ;;  %v231_v49 = vld [vmem:[%s870_s21 + $0x100] sm:$0xff] }
  0x1a   : > { %704 = vmatprep.subr.bf16.mxu1 %v703_v40  ;;  %v225_v46 = vld [vmem:[%s870_s21 + $0xd0] sm:$0xff]  ;;  %v705_v47 = vpack.c.bf16 %v214_v43, %v209_v42  ;;  %v236_v50 = vld [vmem:[%s870_s21 + $0x128] sm:$0xff]  ;;  %v242_v51 = vld [vmem:[%s870_s21 + $0x158] sm:$0xff] }
  0x1b   : > { %v707_v48 = vpack.c.bf16 %v225_v46, %v220_v45  ;;  %v247_v52 = vld [vmem:[%s870_s21 + $0x180] sm:$0xff]  ;;  %v745_v53 = vpack.c.bf16 %v236_v50, %v231_v49  ;;  %v224_v55 = vld [vmem:[%s870_s21 + $0xc8] sm:$0xff]  ;;  %v230_v57 = vld [vmem:[%s870_s21 + $0xf8] sm:$0xff]  ;;  %v823_v45 = vmov 0.0|0.0  }
  0x1c   : > { %v219_v54 = vld [vmem:[%s870_s21 + $0xa0] sm:$0xff]  ;;  %v747_v56 = vpack.c.bf16 %v247_v52, %v242_v51  ;;  %v241_v61 = vld [vmem:[%s870_s21 + $0x150] sm:$0xff]  ;;  %v246_v62 = vld [vmem:[%s870_s21 + $0x178] sm:$0xff] }
  0x1d   : > { %v235_v58 = vld [vmem:[%s870_s21 + $0x120] sm:$0xff]  ;;  %v709_v59 = vpack.c.bf16 %v224_v55, %v219_v54  ;;  %v252_v63 = vld [vmem:[%s870_s21 + $0x1a8] sm:$0xff]  ;;  %v257_v0 = vld [vmem:[%s870_s21 + $0x1d0] sm:$0xff]  ;;  %v749_v1 = vpack.c.bf16 %v246_v62, %v241_v61 }
  0x1e   : > { %738 = vmatpush1.bf16.xpose.msra.mxu0 %v737_v26  ;;  %v711_v60 = vpack.c.bf16 %v235_v58, %v230_v57  ;;  %v229_v2 = vld [vmem:[%s870_s21 + $0xf0] sm:$0xff]  ;;  %v234_v3 = vld [vmem:[%s870_s21 + $0x118] sm:$0xff]  ;;  %v751_v4 = vpack.c.bf16 %v257_v0, %v252_v63  ;;  %v240_v5 = vld [vmem:[%s870_s21 + $0x148] sm:$0xff] }
  0x1f   : > { %740 = vmatprep.subr.bf16.mxu0 %v739_v27  ;;  %v245_v6 = vld [vmem:[%s870_s21 + $0x170] sm:$0xff]  ;;  %v713_v7 = vpack.c.bf16 %v234_v3, %v229_v2  ;;  %v251_v10 = vld [vmem:[%s870_s21 + $0x1a0] sm:$0xff]  ;;  %v256_v13 = vld [vmem:[%s870_s21 + $0x1c8] sm:$0xff] }
  0x20   : > { %v715_v8 = vpack.c.bf16 %v245_v6, %v240_v5  ;;  %v262_v14 = vld [vmem:[%s870_s21 + $0x1f8] sm:$0xff]  ;;  %v267_v15 = vld [vmem:[%s870_s21 + $0x220] sm:$0xff]  ;;  %v753_v16 = vpack.c.bf16 %v256_v13, %v251_v10  ;;  %v244_v18 = vld [vmem:[%s870_s21 + $0x168] sm:$0xff] }
  0x21   : > { %706 = vmatpush1.bf16.xpose.msra.mxu1 %v705_v47  ;;  %v239_v17 = vld [vmem:[%s870_s21 + $0x140] sm:$0xff]  ;;  %v755_v19 = vpack.c.bf16 %v267_v15, %v262_v14  ;;  %v250_v20 = vld [vmem:[%s870_s21 + $0x198] sm:$0xff]  ;;  %v261_v24 = vld [vmem:[%s870_s21 + $0x1f0] sm:$0xff]  ;;  %v280_v14 = vstv %s279_s22 }
  0x22   : > { %708 = vmatprep.subr.bf16.mxu1 %v707_v48  ;;  %v255_v21 = vld [vmem:[%s870_s21 + $0x1c0] sm:$0xff]  ;;  %v717_v22 = vpack.c.bf16 %v244_v18, %v239_v17  ;;  %v266_v25 = vld [vmem:[%s870_s21 + $0x218] sm:$0xff]  ;;  %v272_v26 = vld [vmem:[%s870_s21 + $0x248] sm:$0xff] }
  0x23   : > { %v719_v23 = vpack.c.bf16 %v255_v21, %v250_v20  ;;  %v277_v27 = vld [vmem:[%s870_s21 + $0x270] sm:$0xff]  ;;  %v757_v28 = vpack.c.bf16 %v266_v25, %v261_v24  ;;  %v254_v30 = vld [vmem:[%s870_s21 + $0x1b8] sm:$0xff]  ;;  %v260_v32 = vld [vmem:[%s870_s21 + $0x1e8] sm:$0xff] }
  0x24   : > { %v249_v29 = vld [vmem:[%s870_s21 + $0x190] sm:$0xff]  ;;  %v759_v31 = vpack.c.bf16 %v277_v27, %v272_v26  ;;  %v271_v36 = vld [vmem:[%s870_s21 + $0x240] sm:$0xff]  ;;  %v276_v37 = vld [vmem:[%s870_s21 + $0x268] sm:$0xff] }
  0x25   : > { %v265_v33 = vld [vmem:[%s870_s21 + $0x210] sm:$0xff]  ;;  %v721_v34 = vpack.c.bf16 %v254_v30, %v249_v29  ;;  %v761_v38 = vpack.c.bf16 %v276_v37, %v271_v36  ;;  %v259_v39 = vld [vmem:[%s870_s21 + $0x1e0] sm:$0xff]  ;;  %v264_v40 = vld [vmem:[%s870_s21 + $0x208] sm:$0xff] }
  0x26   : > { %742 = vmatpush1.bf16.xpose.msra.mxu0 %v741_v41  ;;  %v723_v35 = vpack.c.bf16 %v265_v33, %v260_v32  ;;  %v270_v41 = vld [vmem:[%s870_s21 + $0x238] sm:$0xff]  ;;  %v275_v42 = vld [vmem:[%s870_s21 + $0x260] sm:$0xff]  ;;  %v725_v43 = vpack.c.bf16 %v264_v40, %v259_v39  ;;  %v208_v47 = vld [vmem:[%s870_s21 + $0x48] sm:$0xff] }
  0x27   : > { %744 = vmatprep.subr.bf16.mxu0 %v743_v44  ;;  %v727_v44 = vpack.c.bf16 %v275_v42, %v270_v41  ;;  %v203_v46 = vld [vmem:[%s870_s21 + $0x20] sm:$0xff]  ;;  %v269_v49 = vld [vmem:[%s870_s21 + $0x230] sm:$0xff]  ;;  %v274_v50 = vld [vmem:[%s870_s21 + $0x258] sm:$0xff] }
  0x28   : > { %v764_v48 = vpack.c.bf16 %v208_v47, %v203_v46  ;;  %v729_v52 = vpack.c.bf16 %v274_v50, %v269_v49  ;;  %v213_v54 = vld [vmem:[%s870_s21 + $0x70] sm:$0xff]  ;;  %v218_v55 = vld [vmem:[%s870_s21 + $0x98] sm:$0xff]  ;;  %v228_v57 = vld [vmem:[%s870_s21 + $0xe8] sm:$0xff] }
  0x29   : > { %710 = vmatpush1.bf16.xpose.msra.mxu1 %v709_v59  ;;  %v233_v59 = vld [vmem:[%s870_s21 + $0x110] sm:$0xff]  ;;  %v243_v62 = vld [vmem:[%s870_s21 + $0x160] sm:$0xff]  ;;  %v248_v63 = vld [vmem:[%s870_s21 + $0x188] sm:$0xff] }
  0x2a   : > { %712 = vmatprep.subr.bf16.mxu1 %v711_v60  ;;  %v238_v60 = vld [vmem:[%s870_s21 + $0x138] sm:$0xff]  ;;  %v780_v0 = vpack.c.bf16 %v248_v63, %v243_v62  ;;  %v263_v3 = vld [vmem:[%s870_s21 + $0x200] sm:$0xff]  ;;  %v273_v6 = vld [vmem:[%s870_s21 + $0x250] sm:$0xff] }
  0x2b   : > { %v776_v61 = vpack.c.bf16 %v238_v60, %v233_v59 }
  0x2e   : > { %746 = vmatpush1.bf16.xpose.msra.mxu0 %v745_v53  ;;  %v825_v53 = vmov 0.0  }
  0x2f   : > { %748 = vmatprep.subr.bf16.mxu0 %v747_v56  ;;  %v768_v56 = vpack.c.bf16 %v218_v55, %v213_v54 }
  0x31   : > { %714 = vmatpush1.bf16.xpose.msra.mxu1 %v713_v7  ;;  %v278_v7 = vld [vmem:[%s870_s21 + $0x278] sm:$0xff] }
  0x32   : > { %716 = vmatprep.subr.bf16.mxu1 %v715_v8  ;;  %v792_v8 = vpack.c.bf16 %v278_v7, %v273_v6 }
  0x36   : > { %750 = vmatpush1.bf16.xpose.msra.mxu0 %v749_v1  ;;  %v258_v1 = vld [vmem:[%s870_s21 + $0x1d8] sm:$0xff] }
  0x37   : > { %752 = vmatprep.subr.bf16.mxu0 %v751_v4  ;;  %v268_v4 = vld [vmem:[%s870_s21 + $0x228] sm:$0xff] }
  0x38   : > { %v788_v5 = vpack.c.bf16 %v268_v4, %v263_v3 }
  0x39   : > { %718 = vmatpush1.bf16.xpose.msra.mxu1 %v717_v22 }
  0x3a   : > { %720 = vmatprep.subr.bf16.mxu1 %v719_v23 }
  0x3e   : > { %754 = vmatpush1.bf16.xpose.msra.mxu0 %v753_v16 }
  0x3f   : > { %756 = vmatprep.subr.bf16.mxu0 %v755_v19 }
  0x41   : > { %722 = vmatpush1.bf16.xpose.msra.mxu1 %v721_v34 }
  0x42   : > { %724 = vmatprep.subr.bf16.mxu1 %v723_v35 }
  0x46   : > { %758 = vmatpush1.bf16.xpose.msra.mxu0 %v757_v28 }
  0x47   : > { %760 = vmatprep.subr.bf16.mxu0 %v759_v31 }
  0x49   : > { %726 = vmatpush1.bf16.xpose.msra.mxu1 %v725_v43 }
  0x4a   : > { %728 = vmatprep.subr.bf16.mxu1 %v727_v44 }
  0x4e   : > { %762 = vmatpush1.bf16.xpose.msra.mxu0 %v761_v38 }
  0x4f   : > { %763 = vmatprep.subr.bf16.mxu0 %v823_v45 }
  0x51   : > { %730 = vmatpush1.bf16.xpose.msra.mxu1 %v729_v52 }
  0x55   : > { %492 = vmatmul.mubr.f32.vlgmr.msra.gmra.mrb[0].mxu0 %v863_v9  ;;  %v223_v9 = vld [vmem:[%s870_s21 + $0xc0] sm:$0xff] }
  0x56   : > { %766 = vmatpush3.bf16.xpose.msk.msra.mxu0 %vm942_vm1, %v764_v48  ;;  %696 = vmatprep.mubr.msk.f32.mxu0 %vm824_vm2, %v825_v53  ;;  %v772_v58 = vpack.c.bf16 %v228_v57, %v223_v9 }
  0x57   : > { %767 = vmatprep.subr.bf16.mxu0 %v823_v45 }
  0x58   : > { %422 = vmatmul.mubr.f32.vlgmr.msra.gmra.mrb[0].mxu1 %v865_v11  ;;  %v253_v11 = vld [vmem:[%s870_s21 + $0x1b0] sm:$0xff] }
  0x59   : > { %v784_v2 = vpack.c.bf16 %v258_v1, %v253_v11 }
  0x5e   : > { %770 = vmatpush3.bf16.xpose.msk.msra.mxu0 %vm942_vm1, %v768_v56 }
  0x5f   : > { %771 = vmatprep.subr.bf16.mxu0 %v823_v45 }
  0x66   : > { %774 = vmatpush3.bf16.xpose.msk.msra.mxu0 %vm942_vm1, %v772_v58 }
  0x67   : > { %775 = vmatprep.subr.bf16.mxu0 %v823_v45 }
  0x6e   : > { %778 = vmatpush3.bf16.xpose.msk.msra.mxu0 %vm942_vm1, %v776_v61 }
  0x6f   : > { %779 = vmatprep.subr.bf16.mxu0 %v823_v45 }
  0x76   : > { %782 = vmatpush3.bf16.xpose.msk.msra.mxu0 %vm942_vm1, %v780_v0 }
  0x77   : > { %783 = vmatprep.subr.bf16.mxu0 %v823_v45 }
  0x7e   : > { %786 = vmatpush3.bf16.xpose.msk.msra.mxu0 %vm942_vm1, %v784_v2 }
  0x7f   : > { %787 = vmatprep.subr.bf16.mxu0 %v823_v45 }
  0x86   : > { %790 = vmatpush3.bf16.xpose.msk.msra.mxu0 %vm942_vm1, %v788_v5 }
  0x87   : > { %791 = vmatprep.subr.bf16.mxu0 %v823_v45 }
  0x8e   : > { %794 = vmatpush3.bf16.xpose.msk.msra.mxu0 %vm942_vm1, %v792_v8 }
  0x95   : > { %697 = vmatmul.mubr.msk.f32.vlgmr.msra.gmra.mrb[0].mxu0 %vm306_vm0, %v872_v12 }
 0x12b   : > { %v423_v10 = vpop.f32.mrb[0].mxu1 }
 0x12c   : > { %v425_v13 = vpop.f32.mrb[1].mxu1  ;;  %v424_v15 = vadd.f32 %v423_v10, %v280_v14 }
 0x168   : > { %v563_v16 = vpop.f32.mrb[0].mxu0 }
 0x169   : > { %v796_v17 = vadd.f32 %v563_v16, %v424_v15  ;;  %v698_v18 = vpop.f32.mrb[1].mxu0 }
 0x16b   : > { %v567_v19 = vsub.f32 0.0, %v796_v17 }
 0x16d   : > { %v568_v20 = vmul.f32 1.442695, %v567_v19 }
 0x16f   : > { %811 = vpow2.f32 %v568_v20 }
 0x179   : > { %v812_v21 = vpop.eup %811 }
 0x17a   : > { %v570_v22 = vadd.f32 1.0, %v812_v21 }
 0x17c   : > { %813 = vrcp.f32 %v570_v22 }
 0x186   : > { %v814_v12 = vpop.eup %813 }
 0x187   : > { %573 = vst [vmem:[%s197_s25] sm:$0x1] %v814_v12 }
 0x188 PF: > { %s14_s14 = sadd.s32 1, %s821_s14  }
 0x189   : > { %p11_p5 = scmp.ge.s32.totalorder %s14_s14, 5  }
 0x18b   :  { %13 = sbr.rel (!%p11_p5) target bundleno = 2 (0x2), region = 62 }

</bundles_post_ra>
